<compile_context>
chip_gen: v7x
topology: tpu7x:2x2x1
jax: 0.10.0
libtpu: 0.0.40
codegen_flags: <defaults>
</compile_context>

<pallas_src>
import jax
import jax.numpy as jnp
from jax.experimental import pallas as pl
from jax.experimental.pallas import tpu as pltpu

query_size = 32
key_size = 32
value_size1 = 32
value_size2 = 64
output_size = 64

# Lane layout (everything padded to one 128-lane vreg width):
#   x row     : [ q (0..31) | k (32..63) | 1 (lane 64) | zeros (65..127) ]
#   y = x@W_A : [ qout+b_comb (0..63) | zeros (64..95) | logits+b_attn (96..127) ]
#   packed    : [ out (0..63) | attn_w (64..95) | junk (96..127) ]
_FEAT_PAD = 128
_ONES_ROW = query_size + key_size          # 64  (row of W_A hit by the ones column)
_QOUT_OFF = 0
_ATTW_OFF = output_size                    # 64
_LOGIT_OFF = output_size + value_size1     # 96


def attn_kernel(x_ref, wa_ref, w2_ref, packed_ref):
    # One fused MXU dot: qout(+b_comb) in lanes 0..63, logits(+b_attn) in 96..127.
    y = jnp.dot(x_ref[...], wa_ref[...], preferred_element_type=jnp.float32)   # (TB,128)

    logits = y[:, _LOGIT_OFF:_LOGIT_OFF + value_size1]                          # (TB,32)
    # Exact softmax (f32 throughout; no approx reciprocal).
    m = jnp.max(logits, axis=1, keepdims=True)
    e = jnp.exp(logits - m)
    attn_w = e / jnp.sum(e, axis=1, keepdims=True)                              # (TB,32)

    # Second fused dot: W2 = [ V@Wv | I | 0 ]  =>  attn_w @ W2 = [ out_v | attn_w | 0 ].
    # Adding y gives the lane-dense packed output slab in one unmasked 128-lane store.
    packed_ref[...] = (y + jnp.dot(attn_w, w2_ref[...],
                                   preferred_element_type=jnp.float32)
                       ).astype(packed_ref.dtype)


def prepare_attn_params(W_attn, b_attn, W_comb, b_comb):
    """One-time weight prep, hoisted out of the per-step path.

    PyTorch nn.Linear layout: W_attn (vs1, qs+ks), b_attn (vs1,),
                              W_comb (out, qs+vs2), b_comb (out,).
    Returns:
      w_a   : (128, 128) fused weight consuming the row [q | k | 1 | 0-pad]:
              lanes 0..63  -> q @ W_comb.T[:qs] + b_comb          (qout)
              lanes 96..127-> cat(q,k) @ W_attn.T + b_attn        (logits)
      w_val : (vs2, out) = W_comb.T[qs:]   (folded with V in the wrapper)
    """
    wa_t = jnp.asarray(W_attn, jnp.float32).T                      # (qs+ks, vs1)
    wc_t = jnp.asarray(W_comb, jnp.float32).T                      # (qs+vs2, out)
    b_attn = jnp.asarray(b_attn, jnp.float32)
    b_comb = jnp.asarray(b_comb, jnp.float32)

    w_a = jnp.zeros((_FEAT_PAD, _FEAT_PAD), jnp.float32)
    # qout columns (lanes 0..63): only the q rows + bias row contribute.
    w_a = w_a.at[:query_size, _QOUT_OFF:_QOUT_OFF + output_size].set(wc_t[:query_size])
    w_a = w_a.at[_ONES_ROW, _QOUT_OFF:_QOUT_OFF + output_size].set(b_comb)
    # logit columns (lanes 96..127): q and k rows + bias row.
    w_a = w_a.at[:query_size + key_size,
                 _LOGIT_OFF:_LOGIT_OFF + value_size1].set(wa_t)
    w_a = w_a.at[_ONES_ROW, _LOGIT_OFF:_LOGIT_OFF + value_size1].set(b_attn)

    w_val = wc_t[query_size:]                                      # (vs2, out)
    return (w_a, w_val)


def _row_tile(n_rows):
    """Largest row tile that fits comfortably in VMEM; single grid step when possible."""
    if n_rows <= 2048:
        return n_rows
    for t in (2048, 1024, 512, 256, 128, 64, 32, 16, 8):
        if n_rows % t == 0:
            return t
    return n_rows


@jax.jit
def _attn_rows(q_rows, k_rows, v0, params):
    """q_rows (B, qs), k_rows (B, ks), v0 (vs1, vs2) -> ((B, out), (B, vs1))."""
    w_a, w_val = params
    B = q_rows.shape[0]
    dt = jnp.float32

    # TODO(synk): at very large B this wrapper concat roughly doubles input HBM
    # traffic; pass q/k as separate kernel inputs if that regime ever matters.
    x = jnp.concatenate(
        [q_rows.astype(dt), k_rows.astype(dt),
         jnp.ones((B, 1), dt),
         jnp.zeros((B, _FEAT_PAD - _ONES_ROW - 1), dt)], axis=1)           # (B,128)

    # Algebraic fold of the final matmul: attn_w @ V @ Wv == attn_w @ (V @ Wv).
    vw = v0.astype(dt) @ w_val                                              # (vs1,out)
    w2 = jnp.concatenate(
        [vw,
         jnp.eye(value_size1, dtype=dt),
         jnp.zeros((value_size1, _FEAT_PAD - output_size - value_size1), dt)],
        axis=1)                                                             # (vs1,128)

    tb = _row_tile(B)
    packed = pl.pallas_call(
        attn_kernel,
        grid=(B // tb,),
        in_specs=[
            pl.BlockSpec((tb, _FEAT_PAD), lambda i: (i, 0)),
            pl.BlockSpec((_FEAT_PAD, _FEAT_PAD), lambda i: (0, 0)),
            pl.BlockSpec((value_size1, _FEAT_PAD), lambda i: (0, 0)),
        ],
        out_specs=pl.BlockSpec((tb, _FEAT_PAD), lambda i: (i, 0)),
        out_shape=jax.ShapeDtypeStruct((B, _FEAT_PAD), jnp.float32),
        compiler_params=pltpu.CompilerParams(
            dimension_semantics=("parallel",)),
    )(x, w_a, w2)

    out = packed[:, _QOUT_OFF:_QOUT_OFF + output_size]
    attn_w = packed[:, _ATTW_OFF:_ATTW_OFF + value_size1]
    return out, attn_w


def attn_forward(Q, K, V, params):
    """Module-faithful call: Q (1,1,qs), K (1,1,ks), V (1,vs1,vs2)."""
    out, attn_w = _attn_rows(Q[0], K[0], V[0], params)
    return out[None], attn_w                                      # (1,1,out), (1,vs1)


def attn_forward_batched(Q_rows, K_rows, V, params):
    """Many decoder timesteps sharing the same V: Q_rows/K_rows are (B, qs)/(B, ks)."""
    return _attn_rows(Q_rows, K_rows, V[0], params)


# ----------------------------- references ------------------------------------
def reference_forward(Q, K, V, W_attn, b_attn, W_comb, b_comb):
    qk = jnp.concatenate([Q[0], K[0]], axis=1)
    attn_w = jax.nn.softmax(qk @ W_attn.T + b_attn, axis=1)
    applied = attn_w @ V[0]
    out = jnp.concatenate([Q[0], applied], axis=1) @ W_comb.T + b_comb
    return out[None], attn_w


def reference_rows(q_rows, k_rows, v0, W_attn, b_attn, W_comb, b_comb):
    attn_w = jax.nn.softmax(
        jnp.concatenate([q_rows, k_rows], axis=1) @ W_attn.T + b_attn, axis=1)
    applied = attn_w @ v0
    out = jnp.concatenate([q_rows, applied], axis=1) @ W_comb.T + b_comb
    return out, attn_w


if __name__ == "__main__":
    key = jax.random.PRNGKey(0)
    kq, kk, kv, kw1, kb1, kw2, kb2, kqb, kkb = jax.random.split(key, 9)

    Q = jax.random.normal(kq, (1, 1, query_size), dtype=jnp.float32)
    K = jax.random.normal(kk, (1, 1, key_size), dtype=jnp.float32)
    V = jax.random.normal(kv, (1, value_size1, value_size2), dtype=jnp.float32)

    # nn.Linear-layout parameters: weight (out, in), bias (out,)
    W_attn = 0.05 * jax.random.normal(kw1, (value_size1, query_size + key_size), dtype=jnp.float32)
    b_attn = 0.05 * jax.random.normal(kb1, (value_size1,), dtype=jnp.float32)
    W_comb = 0.05 * jax.random.normal(kw2, (output_size, query_size + value_size2), dtype=jnp.float32)
    b_comb = 0.05 * jax.random.normal(kb2, (output_size,), dtype=jnp.float32)

    # One-time weight prep (out of the per-step path).
    params = prepare_attn_params(W_attn, b_attn, W_comb, b_comb)

    # --- module-faithful single-step call (matches the PyTorch forward) -------
    out, attn_w = attn_forward(Q, K, V, params)
    jax.block_until_ready((out, attn_w))

    ref_out, ref_w = reference_forward(Q, K, V, W_attn, b_attn, W_comb, b_comb)
    assert out.shape == (1, 1, output_size)
    assert attn_w.shape == (1, value_size1)
    # Exact softmax + f32 MXU accumulation: only reassociation-level error remains.
    assert jnp.allclose(out, ref_out, atol=1e-4, rtol=1e-4)
    assert jnp.allclose(attn_w, ref_w, atol=1e-4, rtol=1e-4)

    # --- batched call: 16 decoder timesteps sharing V through one pallas_call -
    B = 16
    Qb = jax.random.normal(kqb, (B, query_size), dtype=jnp.float32)
    Kb = jax.random.normal(kkb, (B, key_size), dtype=jnp.float32)
    out_b, attn_w_b = attn_forward_batched(Qb, Kb, V, params)
    jax.block_until_ready((out_b, attn_w_b))

    ref_out_b, ref_w_b = reference_rows(Qb, Kb, V[0], W_attn, b_attn, W_comb, b_comb)
    assert out_b.shape == (B, output_size)
    assert attn_w_b.shape == (B, value_size1)
    assert jnp.allclose(out_b, ref_out_b, atol=1e-4, rtol=1e-4)
    assert jnp.allclose(attn_w_b, ref_w_b, atol=1e-4, rtol=1e-4)

    print("KERNEL_OK")
</pallas_src>

<mosaic_0001>
module attributes {stable_mosaic.version = 11 : i64} {
  func.func @attn_kernel(%arg0: i32, %arg1: memref<1x128xf32, #tpu.memory_space<vmem>>, %arg2: memref<128x128xf32, #tpu.memory_space<vmem>>, %arg3: memref<32x128xf32, #tpu.memory_space<vmem>>, %arg4: memref<1x128xf32, #tpu.memory_space<vmem>>) attributes {dimension_semantics = [#tpu.dimension_semantics<parallel>], iteration_bounds = array<i64: 1>, scalar_prefetch = 0 : i64, scratch_operands = 0 : i64, tpu.core_type = #tpu.core_type<tc>, window_params = [{transform_indices = @transform_0, window_bounds = array<i64: 1, 128>}, {pipeline_mode = #tpu.pipeline_mode<synchronous>, transform_indices = @transform_1, window_bounds = array<i64: 128, 128>}, {pipeline_mode = #tpu.pipeline_mode<synchronous>, transform_indices = @transform_2, window_bounds = array<i64: 32, 128>}, {transform_indices = @transform_3, window_bounds = array<i64: 1, 128>}]} {
    %c0 = arith.constant 0 : index
    %c0_0 = arith.constant 0 : index
    %0 = vector.load %arg1[%c0, %c0_0] : memref<1x128xf32, #tpu.memory_space<vmem>>, vector<1x128xf32>
    %c0_1 = arith.constant 0 : index
    %c0_2 = arith.constant 0 : index
    %1 = vector.load %arg2[%c0_1, %c0_2] : memref<128x128xf32, #tpu.memory_space<vmem>>, vector<128x128xf32>
    %cst = arith.constant dense<0.000000e+00> : vector<1x128xf32>
    %2 = tpu.matmul %0, %1, %cst {dimension_numbers = #tpu.dot_dimension_numbers<[1], [0], [0], [1], [0, 0, 1, 1], [], []>} : vector<1x128xf32>, vector<128x128xf32>, vector<1x128xf32> -> vector<1x128xf32>
    %3 = vector.extract_strided_slice %2 {offsets = [0, 96], sizes = [1, 32], strides = [1, 1]} : vector<1x128xf32> to vector<1x32xf32>
    %cst_3 = arith.constant dense<0xFF800000> : vector<1xf32>
    %4 = vector.multi_reduction <maximumf>, %3, %cst_3 [1] : vector<1x32xf32> to vector<1xf32>
    %5 = vector.shape_cast %4 : vector<1xf32> to vector<1x1xf32>
    %6 = vector.broadcast %5 : vector<1x1xf32> to vector<1x32xf32>
    %7 = arith.subf %3, %6 : vector<1x32xf32>
    %8 = math.exp %7 : vector<1x32xf32>
    %cst_4 = arith.constant dense<0.000000e+00> : vector<1xf32>
    %9 = vector.multi_reduction <add>, %8, %cst_4 [1] : vector<1x32xf32> to vector<1xf32>
    %10 = vector.shape_cast %9 : vector<1xf32> to vector<1x1xf32>
    %11 = vector.broadcast %10 : vector<1x1xf32> to vector<1x32xf32>
    %12 = arith.divf %8, %11 : vector<1x32xf32>
    %c0_5 = arith.constant 0 : index
    %c0_6 = arith.constant 0 : index
    %13 = vector.load %arg3[%c0_5, %c0_6] : memref<32x128xf32, #tpu.memory_space<vmem>>, vector<32x128xf32>
    %cst_7 = arith.constant dense<0.000000e+00> : vector<1x128xf32>
    %14 = tpu.matmul %12, %13, %cst_7 {dimension_numbers = #tpu.dot_dimension_numbers<[1], [0], [0], [1], [0, 0, 1, 1], [], []>} : vector<1x32xf32>, vector<32x128xf32>, vector<1x128xf32> -> vector<1x128xf32>
    %15 = arith.addf %2, %14 : vector<1x128xf32>
    %c0_8 = arith.constant 0 : index
    %c0_9 = arith.constant 0 : index
    %16 = vector.load %arg4[%c0_8, %c0_9] : memref<1x128xf32, #tpu.memory_space<vmem>>, vector<1x128xf32>
    tpu.vector_store %arg4[%c0_8, %c0_9], %15 {strides = array<i32>} : memref<1x128xf32, #tpu.memory_space<vmem>>, vector<1x128xf32>,
    return
  }
  func.func @transform_0(%arg0: i32) -> (i32, i32) {
    %c0_i32 = arith.constant 0 : i32
    %c0_i32_0 = arith.constant 0 : i32
    return %arg0, %c0_i32 : i32, i32
  }
  func.func @transform_1(%arg0: i32) -> (i32, i32) {
    %c0_i32 = arith.constant 0 : i32
    %c0_i32_0 = arith.constant 0 : i32
    %c0_i32_1 = arith.constant 0 : i32
    return %c0_i32, %c0_i32_0 : i32, i32
  }
  func.func @transform_2(%arg0: i32) -> (i32, i32) {
    %c0_i32 = arith.constant 0 : i32
    %c0_i32_0 = arith.constant 0 : i32
    %c0_i32_1 = arith.constant 0 : i32
    return %c0_i32, %c0_i32_0 : i32, i32
  }
  func.func @transform_3(%arg0: i32) -> (i32, i32) {
    %c0_i32 = arith.constant 0 : i32
    %c0_i32_0 = arith.constant 0 : i32
    return %arg0, %c0_i32 : i32, i32
  }
}

</mosaic_0001>

<bundles_post_ra>
// kernel: _attn_rows.1
= control target key start
LH: loop header
LB: loop body
LE: loop exit
PB: predicated region body
PF: predicated region fallthrough
CT: control target
= control target key end

     0   :  { %v311_v0 = vmov 0.0|0.0   ;;  %vm312_vm0 = vmmov 0   ;;  %v313_v4 = vmov 0.0   ;;  %vm101_vm1 = vcmask 1041152   ;;  %s411_s1 = inlined_call_operand.vmem [shape: f32[128,128], index: 1, kind: input, shape index: {}]   ;;  %s412_s0 = inlined_call_operand.vmem [shape: f32[1,128], index: 0, kind: input, shape index: {}]   ;;  %s413_s2 = inlined_call_operand.vmem [shape: f32[32,128], index: 2, kind: input, shape index: {}]   ;;  %s414_s3 = inlined_call_operand.vmem [shape: f32[1,128], index: 3, kind: output, shape index: {}]  }
   0x1   :  { %273 = vmatprep.subr.bf16.mxu0 %v311_v0  ;;  %v15_v1 = vld [vmem:[%s411_s1] sm:$0xff]  ;;  %v16_v2 = vld [vmem:[%s411_s1 + $0x8] sm:$0xff]  ;;  %v17_v3 = vld [vmem:[%s411_s1 + $0x10] sm:$0xff]  ;;  %259 = vmatprep.mubr.msk.f32.mxu0 %vm312_vm0, %v313_v4  ;;  %vm112_vm2 = vcmask 253952   ;;  %vm125_vm3 = vcmask 261120  }
   0x2   :  { %v274_v5 = vpack.c.bf16 %v16_v2, %v15_v1  ;;  %v18_v6 = vld [vmem:[%s411_s1 + $0x18] sm:$0xff]  ;;  %297 = vmatprep.subr.bf16.mxu1 %v311_v0  ;;  %270 = vmatprep.mubr.msk.f32.mxu1 %vm312_vm0, %v313_v4  ;;  %v19_v8 = vld [vmem:[%s411_s1 + $0x20] sm:$0xff]  ;;  %v20_v9 = vld [vmem:[%s411_s1 + $0x28] sm:$0xff] }
   0x3   :  { %v277_v7 = vpack.c.bf16 %v18_v6, %v17_v3  ;;  %v280_v10 = vpack.c.bf16 %v20_v9, %v19_v8  ;;  %v21_v11 = vld [vmem:[%s411_s1 + $0x30] sm:$0xff]  ;;  %v22_v12 = vld [vmem:[%s411_s1 + $0x38] sm:$0xff]  ;;  %v23_v14 = vld [vmem:[%s411_s1 + $0x40] sm:$0xff] }
   0x4   :  { %275 = vmatpush3.bf16.msra.mxu0 %v274_v5  ;;  %v283_v13 = vpack.c.bf16 %v22_v12, %v21_v11  ;;  %v24_v15 = vld [vmem:[%s411_s1 + $0x48] sm:$0xff]  ;;  %v25_v17 = vld [vmem:[%s411_s1 + $0x50] sm:$0xff]  ;;  %v26_v18 = vld [vmem:[%s411_s1 + $0x58] sm:$0xff] }
   0x5   :  { %276 = vmatprep.subr.bf16.mxu0 %v311_v0  ;;  %v286_v16 = vpack.c.bf16 %v24_v15, %v23_v14  ;;  %v289_v19 = vpack.c.bf16 %v26_v18, %v25_v17  ;;  %v27_v20 = vld [vmem:[%s411_s1 + $0x60] sm:$0xff]  ;;  %v28_v21 = vld [vmem:[%s411_s1 + $0x68] sm:$0xff]  ;;  %v29_v23 = vld [vmem:[%s411_s1 + $0x70] sm:$0xff] }
   0x6   :  { %v292_v22 = vpack.c.bf16 %v28_v21, %v27_v20  ;;  %v30_v24 = vld [vmem:[%s411_s1 + $0x78] sm:$0xff]  ;;  %v14_v26 = vld [vmem:[%s412_s0] sm:$0x1]  ;;  %s314_s1 = smov 32   ;;  %v119_v37 = vld [vmem:[%s413_s2 + $0x8] sm:$0xff] }
   0x7   :  { %v295_v25 = vpack.c.bf16 %v30_v24, %v29_v23  ;;  %v118_v36 = vld [vmem:[%s413_s2] sm:$0xff]  ;;  %v120_v38 = vld [vmem:[%s413_s2 + $0x10] sm:$0xff]  ;;  %v121_v40 = vld [vmem:[%s413_s2 + $0x18] sm:$0xff] }
   0x8   :  { %278 = vmatpush3.bf16.msra.mxu0 %v277_v7  ;;  %v298_v39 = vpack.c.bf16 %v119_v37, %v118_v36  ;;  %v301_v41 = vpack.c.bf16 %v121_v40, %v120_v38 }
   0x9   :  { %279 = vmatprep.subr.bf16.mxu0 %v311_v0 }
   0xa   :  { %299 = vmatpush3.bf16.msra.mxu1 %v298_v39 }
   0xb   :  { %300 = vmatprep.subr.bf16.mxu1 %v311_v0 }
   0xc   :  { %281 = vmatpush3.bf16.msra.mxu0 %v280_v10 }
   0xd   :  { %282 = vmatprep.subr.bf16.mxu0 %v311_v0 }
   0xe   :  { %302 = vmatpush3.bf16.msra.mxu1 %v301_v41 }
  0x10   :  { %284 = vmatpush3.bf16.msra.mxu0 %v283_v13 }
  0x11   :  { %285 = vmatprep.subr.bf16.mxu0 %v311_v0 }
  0x14   :  { %287 = vmatpush3.bf16.msra.mxu0 %v286_v16 }
  0x15   :  { %288 = vmatprep.subr.bf16.mxu0 %v311_v0 }
  0x18   :  { %290 = vmatpush3.bf16.msra.mxu0 %v289_v19 }
  0x19   :  { %291 = vmatprep.subr.bf16.mxu0 %v311_v0 }
  0x1c   :  { %293 = vmatpush3.bf16.msra.mxu0 %v292_v22 }
  0x1d   :  { %294 = vmatprep.subr.bf16.mxu0 %v311_v0 }
  0x20   :  { %296 = vmatpush3.bf16.msra.mxu0 %v295_v25 }
  0x23   :  { %260 = vmatmul.mubr.f32.vlgmr.msra.gmra.mrb[0].mxu0 %v14_v26 }
  0xf6   :  { %v97_v27 = vpop.f32.mrb[0].mxu0 }
  0xf7   :  { %v261_v28 = vpop.f32.mrb[1].mxu0  ;;  %v102_v29 = vsel %vm101_vm1, %v97_v27, -inf }
  0xf8   :  { %103 = vmax.xlane.f32.xlu0 %v102_v29 }
 0x185   :  { %v104_v30 = vpop.xlane.xlu0 %103 }
 0x186   :  { %v105_v31 = vsub.f32 %v97_v27, %v104_v30 }
 0x188   :  { %v106_v32 = vmul.f32 1.442695, %v105_v31 }
 0x18a   :  { %307 = vpow2.f32 %v106_v32 }
 0x194   :  { %v308_v33 = vpop.eup %307 }
 0x195   :  { %109 = vrot.lane.b32.xlu0 %v308_v33, %s314_s1 }
 0x207   :  { %v110_v34 = vpop.permute.xlu0 %109 }
 0x208   :  { %v113_v35 = vsel %vm112_vm2, %v110_v34, 0.0 }
 0x209   :  { %114 = vadd.xlane.f32.xlu1 %v113_v35 }
 0x296   :  { %v115_v42 = vpop.xlane.xlu1 %114 }
 0x297   :  { %309 = vrcp.f32 %v115_v42 }
 0x2a1   :  { %v310_v43 = vpop.eup %309 }
 0x2a2   :  { %v117_v44 = vmul.f32 %v310_v43, %v308_v33 }
 0x2a4   :  { %123 = vrot.lane.b32.xlu1 %v117_v44, %s314_s1 }
 0x316   :  { %v124_v45 = vpop.permute.xlu1 %123 }
 0x317   :  { %271 = vmatmul.mubr.msk.f32.vlgmr.msra.gmra.mrb[0].mxu1 %vm125_vm3, %v124_v45 }
 0x3ea   :  { %v194_v46 = vpop.f32.mrb[0].mxu1 }
 0x3eb   :  { %v198_v47 = vadd.f32 %v194_v46, %v97_v27  ;;  %v272_v48 = vpop.f32.mrb[1].mxu1 }
 0x3ed   :  { %199 = vst [vmem:[%s414_s3] sm:$0x1] %v198_v47 }

</bundles_post_ra>
